<compile_context>
chip_gen: v7x
topology: tpu7x:2x2x1
jax: 0.10.0
libtpu: 0.0.40
codegen_flags: <defaults>
</compile_context>

<pallas_src>
import functools
import math

import jax
import jax.numpy as jnp
from jax.experimental import pallas as pl
from jax.experimental.pallas import tpu as pltpu


def _round_up(x, m):
    return (x + m - 1) // m * m


# ---------------------------------------------------------------------------
# Kernel: one (batch n, row-band b) tile of the fused ensemble 3x3 conv.
#
#   w_ref: (c_pad, iC*9)       all replicas' weights, tap-major columns
#                              (col = (kh*3 + kw)*iC + c); resident in VMEM.
#   b_ref: (c_pad, 1)          all replicas' biases (f32); resident in VMEM.
#   x_ref: (1, 1, iC, BW)      flattened, height-halo'd input band,
#                              BW = (TH+2)*W + 2, with
#                              x[.,.,c, 1 + r*W + col] = x_hpad[c, band_row r, col].
#   o_ref: (1, 1, c_pad, TH*W) transposed output tile (pixels lane-dense).
#
# im2col is fused: for tap (kh, kw) the patch row is a static lane-shifted
# window of the flat band (shift = kh*W + kw).  The width-boundary wrap-around
# (columns that should be zero padding) is killed with a per-column mask.
# 9 small MXU matmuls accumulate in f32; bias is a lane-broadcast add.
# ---------------------------------------------------------------------------
def _fused_ensemble_conv3x3_kernel(w_ref, b_ref, x_ref, o_ref, *, iC, TH, W, cdt):
    THW = TH * W
    # Output-column index (0..W-1) of every lane, for width-padding masks.
    col = jax.lax.broadcasted_iota(jnp.int32, (iC, THW), 1) % W
    keep_left = (col != 0).astype(cdt)        # kills kw == 0 taps at w == 0
    keep_right = (col != W - 1).astype(cdt)   # kills kw == 2 taps at w == W-1

    acc = None
    for kh in range(3):
        for kw in range(3):
            start = kh * W + kw                              # static lane offset
            patch = x_ref[0, 0, :, start:start + THW]        # (iC, THW)
            if kw == 0:
                patch = patch * keep_left
            elif kw == 2:
                patch = patch * keep_right
            t = kh * 3 + kw
            w_tap = w_ref[:, t * iC:(t + 1) * iC]            # (c_pad, iC)
            d = jnp.dot(w_tap, patch, preferred_element_type=jnp.float32)
            acc = d if acc is None else acc + d
    acc = acc + b_ref[...]                                   # (c_pad, 1) lane-broadcast
    o_ref[0, 0, :, :] = acc.astype(o_ref.dtype)


# ---------------------------------------------------------------------------
# Generation-aware VMEM budgeting / band selection (all trace-time Python).
# ---------------------------------------------------------------------------
def _vmem_budget_bytes():
    """(tile budget, explicit scoped-VMEM limit) per TensorCore."""
    phys = 64 * 1024 * 1024                    # conservative default (v7x per-TC)
    try:
        info = pltpu.get_tpu_info()
        cap = getattr(info, "vmem_capacity_bytes", None)
        if cap:
            phys = int(cap)
    except Exception:
        pass
    budget = min(phys * 5 // 8, 56 * 1024 * 1024)   # ~40 MiB on v7x, ~56 MiB on v5e/v6e
    limit = min(phys * 3 // 4, budget + (8 << 20))
    return int(budget), int(limit)


def _est_vmem_bytes(iC, c_pad, K, TH, W, bpe_in, bpe_out):
    """Estimated VMEM footprint for one grid step (counts double buffers)."""
    lane = lambda n: _round_up(n, 128)
    sub = lambda n: _round_up(n, 8)
    THW, BW = TH * W, (TH + 2) * W + 2
    w_b = sub(c_pad) * lane(K) * bpe_in * 2        # resident weights (default 2 bufs)
    bia = sub(c_pad) * 128 * 4 * 2                 # bias
    x_b = sub(iC) * lane(BW) * bpe_in * 2          # input band, double buffered
    o_b = sub(c_pad) * lane(THW) * bpe_out * 2     # output tile, double buffered
    acc = sub(c_pad) * lane(THW) * 4               # f32 accumulator value
    tmp = 3 * sub(iC) * lane(THW) * 4              # sliced / masked patch temporaries
    return w_b + bia + x_b + o_b + acc + tmp


def _choose_band_rows(N, H, W, iC, c_pad, K, bpe_in, bpe_out, budget, band_rows=None):
    """Pick the band height TH (a divisor of H)."""
    divisors = [d for d in range(1, H + 1) if H % d == 0]
    if band_rows is not None:                      # manual override (testing)
        cands = [d for d in divisors if d <= max(int(band_rows), 1)]
        return max(cands) if cands else 1
    feasible = [th for th in sorted(divisors, reverse=True)
                if _est_vmem_bytes(iC, c_pad, K, th, W, bpe_in, bpe_out) <= budget]
    if not feasible:
        return 1
    aligned = [th for th in feasible if (th * W) % 128 == 0]   # lane-dense stores
    pool = aligned if aligned else feasible
    th = pool[0]                                   # largest feasible band
    # v7x megacore: prefer an even total grid count if it costs <= a 2x smaller band.
    if (N * (H // th)) % 2 == 1:
        evens = [t for t in pool if (N * (H // t)) % 2 == 0]
        if evens and 2 * evens[0] >= th:
            th = evens[0]
    return th


# ---------------------------------------------------------------------------
# Public wrapper.
# ---------------------------------------------------------------------------
@functools.partial(jax.jit, static_argnames=("use_bf16", "out_layout", "band_rows"))
def bayesian_model_forward(x, weights, biases, *, use_bf16=False,
                           out_layout="SNCHW", band_rows=None):
    """Ensemble forward: S replicas of Conv2d(iC->oC, k=3, s=1, p=1) on x.

    Args:
      x:        (N, iC, H, W)      float32, NCHW.
      weights:  (S, oC, iC, 3, 3)  float32 -- one Conv2d weight per replica.
      biases:   (S, oC)            float32 -- one Conv2d bias per replica.
      use_bf16: compute (and store the output) in bf16 with f32 MXU
                accumulation; ~1e-2 relative error vs. Conv2d in f32.
      out_layout: "SNCHW" (PyTorch semantics) or "NSCHW" (zero-transpose
                return when a single row-band per image is used).
      band_rows: optional band-height override (testing / tuning).

    Returns:
      (S, N, oC, H, W)  (or (N, S, oC, H, W) for "NSCHW"); bf16 if use_bf16.
    """
    if out_layout not in ("SNCHW", "NSCHW"):
        raise ValueError(f"out_layout must be 'SNCHW' or 'NSCHW', got {out_layout!r}")

    N, iC, H, W = x.shape
    S, oC = weights.shape[0], weights.shape[1]
    assert weights.shape == (S, oC, iC, 3, 3), weights.shape
    C_out = S * oC
    c_pad = _round_up(C_out, 8)        # sublane padding only (no 128-lane blowup)
    K = iC * 9

    compute_dtype = jnp.bfloat16 if use_bf16 else jnp.float32
    out_dtype = jnp.bfloat16 if use_bf16 else jnp.float32
    bpe = 2 if use_bf16 else 4

    budget, vmem_limit = _vmem_budget_bytes()
    TH = _choose_band_rows(N, H, W, iC, c_pad, K, bpe, bpe, budget, band_rows)
    nb = H // TH
    THW = TH * W
    BW = (TH + 2) * W + 2

    # ---- host-side prep: ~(1 + 2/TH)x input duplication only (no 9x im2col) --
    xc = x.astype(compute_dtype)
    xp = jnp.pad(xc, ((0, 0), (0, 0), (1, 1), (0, 0)))            # height halo only
    if nb == 1:
        bands = xp[:, None]                                        # (N, 1, iC, H+2, W)
    else:
        bands = jnp.stack(
            [xp[:, :, b * TH: b * TH + TH + 2, :] for b in range(nb)], axis=1)
    bands = bands.reshape(N, nb, iC, (TH + 2) * W)
    bands = jnp.pad(bands, ((0, 0), (0, 0), (0, 0), (1, 1)))       # (N, nb, iC, BW)

    # Fused (S*oC, iC*9) weight matrix, tap-major columns; padded rows are zero.
    w2 = jnp.transpose(weights, (0, 1, 3, 4, 2)).reshape(C_out, K)
    b2 = biases.reshape(C_out, 1).astype(jnp.float32)
    if c_pad != C_out:
        w2 = jnp.pad(w2, ((0, c_pad - C_out), (0, 0)))
        b2 = jnp.pad(b2, ((0, c_pad - C_out), (0, 0)))
    w2 = w2.astype(compute_dtype)

    kernel = functools.partial(
        _fused_ensemble_conv3x3_kernel, iC=iC, TH=TH, W=W, cdt=compute_dtype)

    flops = 2 * C_out * K * N * H * W
    bytes_accessed = (bands.size * bpe + w2.size * bpe + b2.size * 4
                      + N * nb * c_pad * THW * bpe)

    out4 = pl.pallas_call(
        kernel,
        out_shape=jax.ShapeDtypeStruct((N, nb, c_pad, THW), out_dtype),
        grid_spec=pltpu.PrefetchScalarGridSpec(
            num_scalar_prefetch=0,
            grid=(N, nb),
            in_specs=[
                # fused weights / bias: constant block index -> fetched once,
                # stays resident across the whole grid.
                pl.BlockSpec((c_pad, K), lambda n, b: (0, 0)),
                pl.BlockSpec((c_pad, 1), lambda n, b: (0, 0)),
                # flattened, halo'd input band for this (batch, band).
                pl.BlockSpec((1, 1, iC, BW), lambda n, b: (n, b, 0, 0)),
            ],
            # lane-dense output tile (unmasked stores when THW % 128 == 0).
            out_specs=pl.BlockSpec((1, 1, c_pad, THW), lambda n, b: (n, b, 0, 0)),
        ),
        compiler_params=pltpu.CompilerParams(
            # independent (batch, band) tiles -> shard across v7x's two TCs.
            dimension_semantics=("parallel", "parallel"),
            vmem_limit_bytes=int(vmem_limit),
        ),
        cost_estimate=pl.CostEstimate(
            flops=flops, transcendentals=0, bytes_accessed=int(bytes_accessed)),
    )(w2, b2, bands)

    out = out4[:, :, :C_out, :].reshape(N, nb, S, oC, TH, W)
    if out_layout == "NSCHW":
        # Pure reshape (no HBM transpose pass) when nb == 1.
        return jnp.transpose(out, (0, 2, 3, 1, 4, 5)).reshape(N, S, oC, H, W)
    # PyTorch module semantics: (S, N, oC, H, W).
    return jnp.transpose(out, (2, 0, 3, 1, 4, 5)).reshape(S, N, oC, H, W)


def _reference_forward(x, weights, biases):
    """Pure-JAX reference (lax conv per replica) for correctness checks."""
    def one(w, b):
        y = jax.lax.conv_general_dilated(
            x, w, window_strides=(1, 1), padding=((1, 1), (1, 1)),
            dimension_numbers=("NCHW", "OIHW", "NCHW"))
        return y + b[None, :, None, None]
    return jax.vmap(one)(weights, biases)


if __name__ == "__main__":
    # Small synthetic shapes consistent with the module's forward contract.
    N, iC, H, W = 2, 4, 16, 16
    oC = 4
    S = 4   # n_samples (module default is 20; kept small for this run)

    key = jax.random.PRNGKey(0)
    kx, kw, kb, kbeta = jax.random.split(key, 4)

    x = jax.random.normal(kx, (N, iC, H, W), dtype=jnp.float32)

    # Deterministic per-replica parameters (stand-in for reset_parameters()).
    fan_in = iC * 3 * 3
    bound = 1.0 / math.sqrt(fan_in)
    weights = jax.random.uniform(kw, (S, oC, iC, 3, 3), jnp.float32, -bound, bound)
    biases = jax.random.uniform(kb, (S, oC), jnp.float32, -bound, bound)

    # Per-sample log_beta ~ log(Gamma(shape=3, rate=1e-6)); kept for structural
    # fidelity with the PyTorch module but not consumed by forward().
    log_beta = jnp.log(jax.random.gamma(kbeta, 3.0, (S,), jnp.float32) / 1e-6)
    _ = log_beta

    ref = _reference_forward(x, weights, biases)

    # f32 path, single full-image band per batch element (grid = (N, 1)).
    out = jax.block_until_ready(bayesian_model_forward(x, weights, biases))
    assert out.shape == (S, N, oC, H, W), out.shape
    if not jnp.allclose(out, ref, rtol=1e-3, atol=1e-3):
        raise AssertionError("f32 fused-im2col ensemble conv mismatch vs reference")

    # Multi-band path (exercises the halo'd band duplication + width masking).
    out_b = jax.block_until_ready(
        bayesian_model_forward(x, weights, biases, band_rows=8))
    if not jnp.allclose(out_b, ref, rtol=1e-3, atol=1e-3):
        raise AssertionError("multi-band fused-im2col ensemble conv mismatch")

    # bf16 inputs + bf16 output (f32 MXU accumulation) for v6e/v7x throughput.
    out_bf = jax.block_until_ready(
        bayesian_model_forward(x, weights, biases, use_bf16=True))
    if not jnp.allclose(out_bf.astype(jnp.float32), ref, rtol=6e-2, atol=6e-2):
        raise AssertionError("bf16 fused-im2col ensemble conv mismatch")

    # NSCHW layout: zero-transpose return path (pure reshape when nb == 1).
    out_n = jax.block_until_ready(
        bayesian_model_forward(x, weights, biases, out_layout="NSCHW"))
    if not jnp.allclose(jnp.transpose(out_n, (1, 0, 2, 3, 4)), ref,
                        rtol=1e-3, atol=1e-3):
        raise AssertionError("NSCHW layout path mismatch")

    # TODO(synk): SVGD training machinery (_log_joint, test_model's multiscale
    # solver pipeline) is host/optimizer-side and intentionally not a kernel.
    print("KERNEL_OK")
</pallas_src>

<mosaic_0001>
module attributes {stable_mosaic.version = 11 : i64} {
  func.func @_fused_ensemble_conv3x3_kernel(%arg0: i32, %arg1: i32, %arg2: memref<16x36xf32, #tpu.memory_space<vmem>>, %arg3: memref<16x1xf32, #tpu.memory_space<vmem>>, %arg4: memref<1x1x4x290xf32, #tpu.memory_space<vmem>>, %arg5: memref<1x1x16x256xf32, #tpu.memory_space<vmem>>) attributes {dimension_semantics = [#tpu.dimension_semantics<parallel>, #tpu.dimension_semantics<parallel>], iteration_bounds = array<i64: 2, 1>, scalar_prefetch = 0 : i64, scratch_operands = 0 : i64, tpu.core_type = #tpu.core_type<tc>, window_params = [{pipeline_mode = #tpu.pipeline_mode<synchronous>, transform_indices = @transform_0, window_bounds = array<i64: 16, 36>}, {pipeline_mode = #tpu.pipeline_mode<synchronous>, transform_indices = @transform_1, window_bounds = array<i64: 16, 1>}, {transform_indices = @transform_2, window_bounds = array<i64: 1, 1, 4, 290>}, {transform_indices = @transform_3, window_bounds = array<i64: 1, 1, 16, 256>}]} {
    %0 = tpu.iota {dimensions = array<i32: 1>} : vector<4x256xi32>
    %c16_i32 = arith.constant 16 : i32
    %c0_i32 = arith.constant 0 : i32
    %1 = arith.cmpi eq, %c16_i32, %c0_i32 : i32
    %c1_i32 = arith.constant 1 : i32
    %2 = arith.select %1, %c1_i32, %c16_i32 : i32
    %3 = vector.broadcast %2 : i32 to vector<4x256xi32>
    %4 = arith.remsi %0, %3 : vector<4x256xi32>
    %c0_i32_0 = arith.constant 0 : i32
    %5 = vector.broadcast %c0_i32_0 : i32 to vector<4x256xi32>
    %6 = arith.cmpi ne, %4, %5 : vector<4x256xi32>
    %c0_i32_1 = arith.constant 0 : i32
    %7 = vector.broadcast %c0_i32_1 : i32 to vector<4x256xi32>
    %8 = arith.cmpi slt, %4, %7 : vector<4x256xi32>
    %c0_i32_2 = arith.constant 0 : i32
    %9 = arith.cmpi slt, %2, %c0_i32_2 : i32
    %10 = vector.broadcast %9 : i1 to vector<4x256xi1>
    %11 = vector.broadcast %10 : vector<4x256xi1> to vector<4x256xi1>
    %12 = arith.xori %8, %11 : vector<4x256xi1>
    %13 = arith.andi %12, %6 : vector<4x256xi1>
    %14 = vector.broadcast %2 : i32 to vector<4x256xi32>
    %15 = arith.addi %4, %14 : vector<4x256xi32>
    %16 = arith.select %13, %15, %4 : vector<4x256xi1>, vector<4x256xi32>
    %c0_i32_3 = arith.constant 0 : i32
    %17 = vector.broadcast %c0_i32_3 : i32 to vector<4x256xi32>
    %18 = arith.cmpi ne, %16, %17 : vector<4x256xi32>
    %19 = arith.extui %18 : vector<4x256xi1> to vector<4x256xi32>
    %20 = arith.sitofp %19 : vector<4x256xi32> to vector<4x256xf32>
    %c15_i32 = arith.constant 15 : i32
    %21 = vector.broadcast %c15_i32 : i32 to vector<4x256xi32>
    %22 = arith.cmpi ne, %16, %21 : vector<4x256xi32>
    %23 = arith.extui %22 : vector<4x256xi1> to vector<4x256xi32>
    %24 = arith.sitofp %23 : vector<4x256xi32> to vector<4x256xf32>
    %c0 = arith.constant 0 : index
    %c0_4 = arith.constant 0 : index
    %c0_5 = arith.constant 0 : index
    %c0_6 = arith.constant 0 : index
    %25 = vector.load %arg4[%c0, %c0_4, %c0_5, %c0_6] : memref<1x1x4x290xf32, #tpu.memory_space<vmem>>, vector<1x1x4x256xf32>
    %26 = vector.shape_cast %25 : vector<1x1x4x256xf32> to vector<4x256xf32>
    %27 = arith.mulf %26, %20 : vector<4x256xf32>
    %c0_7 = arith.constant 0 : index
    %c0_8 = arith.constant 0 : index
    %28 = vector.load %arg2[%c0_7, %c0_8] : memref<16x36xf32, #tpu.memory_space<vmem>>, vector<16x4xf32>
    %cst = arith.constant dense<0.000000e+00> : vector<16x256xf32>
    %29 = tpu.matmul %28, %27, %cst {dimension_numbers = #tpu.dot_dimension_numbers<[1], [0], [0], [1], [0, 0, 1, 1], [], []>} : vector<16x4xf32>, vector<4x256xf32>, vector<16x256xf32> -> vector<16x256xf32>
    %c0_9 = arith.constant 0 : index
    %c0_10 = arith.constant 0 : index
    %c0_11 = arith.constant 0 : index
    %c1 = arith.constant 1 : index
    %30 = vector.load %arg4[%c0_9, %c0_10, %c0_11, %c1] : memref<1x1x4x290xf32, #tpu.memory_space<vmem>>, vector<1x1x4x256xf32>
    %31 = vector.shape_cast %30 : vector<1x1x4x256xf32> to vector<4x256xf32>
    %c0_12 = arith.constant 0 : index
    %c4 = arith.constant 4 : index
    %32 = vector.load %arg2[%c0_12, %c4] : memref<16x36xf32, #tpu.memory_space<vmem>>, vector<16x4xf32>
    %cst_13 = arith.constant dense<0.000000e+00> : vector<16x256xf32>
    %33 = tpu.matmul %32, %31, %cst_13 {dimension_numbers = #tpu.dot_dimension_numbers<[1], [0], [0], [1], [0, 0, 1, 1], [], []>} : vector<16x4xf32>, vector<4x256xf32>, vector<16x256xf32> -> vector<16x256xf32>
    %34 = arith.addf %29, %33 : vector<16x256xf32>
    %c0_14 = arith.constant 0 : index
    %c0_15 = arith.constant 0 : index
    %c0_16 = arith.constant 0 : index
    %c2 = arith.constant 2 : index
    %35 = vector.load %arg4[%c0_14, %c0_15, %c0_16, %c2] : memref<1x1x4x290xf32, #tpu.memory_space<vmem>>, vector<1x1x4x256xf32>
    %36 = vector.shape_cast %35 : vector<1x1x4x256xf32> to vector<4x256xf32>
    %37 = arith.mulf %36, %24 : vector<4x256xf32>
    %c0_17 = arith.constant 0 : index
    %c8 = arith.constant 8 : index
    %38 = vector.load %arg2[%c0_17, %c8] : memref<16x36xf32, #tpu.memory_space<vmem>>, vector<16x4xf32>
    %cst_18 = arith.constant dense<0.000000e+00> : vector<16x256xf32>
    %39 = tpu.matmul %38, %37, %cst_18 {dimension_numbers = #tpu.dot_dimension_numbers<[1], [0], [0], [1], [0, 0, 1, 1], [], []>} : vector<16x4xf32>, vector<4x256xf32>, vector<16x256xf32> -> vector<16x256xf32>
    %40 = arith.addf %34, %39 : vector<16x256xf32>
    %c0_19 = arith.constant 0 : index
    %c0_20 = arith.constant 0 : index
    %c0_21 = arith.constant 0 : index
    %c16 = arith.constant 16 : index
    %41 = vector.load %arg4[%c0_19, %c0_20, %c0_21, %c16] : memref<1x1x4x290xf32, #tpu.memory_space<vmem>>, vector<1x1x4x256xf32>
    %42 = vector.shape_cast %41 : vector<1x1x4x256xf32> to vector<4x256xf32>
    %43 = arith.mulf %42, %20 : vector<4x256xf32>
    %c0_22 = arith.constant 0 : index
    %c12 = arith.constant 12 : index
    %44 = vector.load %arg2[%c0_22, %c12] : memref<16x36xf32, #tpu.memory_space<vmem>>, vector<16x4xf32>
    %cst_23 = arith.constant dense<0.000000e+00> : vector<16x256xf32>
    %45 = tpu.matmul %44, %43, %cst_23 {dimension_numbers = #tpu.dot_dimension_numbers<[1], [0], [0], [1], [0, 0, 1, 1], [], []>} : vector<16x4xf32>, vector<4x256xf32>, vector<16x256xf32> -> vector<16x256xf32>
    %46 = arith.addf %40, %45 : vector<16x256xf32>
    %c0_24 = arith.constant 0 : index
    %c0_25 = arith.constant 0 : index
    %c0_26 = arith.constant 0 : index
    %c17 = arith.constant 17 : index
    %47 = vector.load %arg4[%c0_24, %c0_25, %c0_26, %c17] : memref<1x1x4x290xf32, #tpu.memory_space<vmem>>, vector<1x1x4x256xf32>
    %48 = vector.shape_cast %47 : vector<1x1x4x256xf32> to vector<4x256xf32>
    %c0_27 = arith.constant 0 : index
    %c16_28 = arith.constant 16 : index
    %49 = vector.load %arg2[%c0_27, %c16_28] : memref<16x36xf32, #tpu.memory_space<vmem>>, vector<16x4xf32>
    %cst_29 = arith.constant dense<0.000000e+00> : vector<16x256xf32>
    %50 = tpu.matmul %49, %48, %cst_29 {dimension_numbers = #tpu.dot_dimension_numbers<[1], [0], [0], [1], [0, 0, 1, 1], [], []>} : vector<16x4xf32>, vector<4x256xf32>, vector<16x256xf32> -> vector<16x256xf32>
    %51 = arith.addf %46, %50 : vector<16x256xf32>
    %c0_30 = arith.constant 0 : index
    %c0_31 = arith.constant 0 : index
    %c0_32 = arith.constant 0 : index
    %c18 = arith.constant 18 : index
    %52 = vector.load %arg4[%c0_30, %c0_31, %c0_32, %c18] : memref<1x1x4x290xf32, #tpu.memory_space<vmem>>, vector<1x1x4x256xf32>
    %53 = vector.shape_cast %52 : vector<1x1x4x256xf32> to vector<4x256xf32>
    %54 = arith.mulf %53, %24 : vector<4x256xf32>
    %c0_33 = arith.constant 0 : index
    %c20 = arith.constant 20 : index
    %55 = vector.load %arg2[%c0_33, %c20] : memref<16x36xf32, #tpu.memory_space<vmem>>, vector<16x4xf32>
    %cst_34 = arith.constant dense<0.000000e+00> : vector<16x256xf32>
    %56 = tpu.matmul %55, %54, %cst_34 {dimension_numbers = #tpu.dot_dimension_numbers<[1], [0], [0], [1], [0, 0, 1, 1], [], []>} : vector<16x4xf32>, vector<4x256xf32>, vector<16x256xf32> -> vector<16x256xf32>
    %57 = arith.addf %51, %56 : vector<16x256xf32>
    %c0_35 = arith.constant 0 : index
    %c0_36 = arith.constant 0 : index
    %c0_37 = arith.constant 0 : index
    %c32 = arith.constant 32 : index
    %58 = vector.load %arg4[%c0_35, %c0_36, %c0_37, %c32] : memref<1x1x4x290xf32, #tpu.memory_space<vmem>>, vector<1x1x4x256xf32>
    %59 = vector.shape_cast %58 : vector<1x1x4x256xf32> to vector<4x256xf32>
    %60 = arith.mulf %59, %20 : vector<4x256xf32>
    %c0_38 = arith.constant 0 : index
    %c24 = arith.constant 24 : index
    %61 = vector.load %arg2[%c0_38, %c24] : memref<16x36xf32, #tpu.memory_space<vmem>>, vector<16x4xf32>
    %cst_39 = arith.constant dense<0.000000e+00> : vector<16x256xf32>
    %62 = tpu.matmul %61, %60, %cst_39 {dimension_numbers = #tpu.dot_dimension_numbers<[1], [0], [0], [1], [0, 0, 1, 1], [], []>} : vector<16x4xf32>, vector<4x256xf32>, vector<16x256xf32> -> vector<16x256xf32>
    %63 = arith.addf %57, %62 : vector<16x256xf32>
    %c0_40 = arith.constant 0 : index
    %c0_41 = arith.constant 0 : index
    %c0_42 = arith.constant 0 : index
    %c33 = arith.constant 33 : index
    %64 = vector.load %arg4[%c0_40, %c0_41, %c0_42, %c33] : memref<1x1x4x290xf32, #tpu.memory_space<vmem>>, vector<1x1x4x256xf32>
    %65 = vector.shape_cast %64 : vector<1x1x4x256xf32> to vector<4x256xf32>
    %c0_43 = arith.constant 0 : index
    %c28 = arith.constant 28 : index
    %66 = vector.load %arg2[%c0_43, %c28] : memref<16x36xf32, #tpu.memory_space<vmem>>, vector<16x4xf32>
    %cst_44 = arith.constant dense<0.000000e+00> : vector<16x256xf32>
    %67 = tpu.matmul %66, %65, %cst_44 {dimension_numbers = #tpu.dot_dimension_numbers<[1], [0], [0], [1], [0, 0, 1, 1], [], []>} : vector<16x4xf32>, vector<4x256xf32>, vector<16x256xf32> -> vector<16x256xf32>
    %68 = arith.addf %63, %67 : vector<16x256xf32>
    %c0_45 = arith.constant 0 : index
    %c0_46 = arith.constant 0 : index
    %c0_47 = arith.constant 0 : index
    %c34 = arith.constant 34 : index
    %69 = vector.load %arg4[%c0_45, %c0_46, %c0_47, %c34] : memref<1x1x4x290xf32, #tpu.memory_space<vmem>>, vector<1x1x4x256xf32>
    %70 = vector.shape_cast %69 : vector<1x1x4x256xf32> to vector<4x256xf32>
    %71 = arith.mulf %70, %24 : vector<4x256xf32>
    %c0_48 = arith.constant 0 : index
    %c32_49 = arith.constant 32 : index
    %72 = vector.load %arg2[%c0_48, %c32_49] : memref<16x36xf32, #tpu.memory_space<vmem>>, vector<16x4xf32>
    %cst_50 = arith.constant dense<0.000000e+00> : vector<16x256xf32>
    %73 = tpu.matmul %72, %71, %cst_50 {dimension_numbers = #tpu.dot_dimension_numbers<[1], [0], [0], [1], [0, 0, 1, 1], [], []>} : vector<16x4xf32>, vector<4x256xf32>, vector<16x256xf32> -> vector<16x256xf32>
    %74 = arith.addf %68, %73 : vector<16x256xf32>
    %c0_51 = arith.constant 0 : index
    %c0_52 = arith.constant 0 : index
    %75 = vector.load %arg3[%c0_51, %c0_52] : memref<16x1xf32, #tpu.memory_space<vmem>>, vector<16x1xf32>
    %76 = vector.broadcast %75 : vector<16x1xf32> to vector<16x256xf32>
    %77 = arith.addf %74, %76 : vector<16x256xf32>
    %c0_53 = arith.constant 0 : index
    %c0_54 = arith.constant 0 : index
    %c0_55 = arith.constant 0 : index
    %c0_56 = arith.constant 0 : index
    %78 = vector.load %arg5[%c0_53, %c0_54, %c0_55, %c0_56] : memref<1x1x16x256xf32, #tpu.memory_space<vmem>>, vector<1x1x16x256xf32>
    %79 = vector.shape_cast %78 : vector<1x1x16x256xf32> to vector<16x256xf32>
    %80 = vector.shape_cast %77 : vector<16x256xf32> to vector<1x1x16x256xf32>
    tpu.vector_store %arg5[%c0_53, %c0_54, %c0_55, %c0_56], %80 {strides = array<i32>} : memref<1x1x16x256xf32, #tpu.memory_space<vmem>>, vector<1x1x16x256xf32>,
    return
  }
  func.func @transform_0(%arg0: i32, %arg1: i32) -> (i32, i32) {
    %c0_i32 = arith.constant 0 : i32
    %c0_i32_0 = arith.constant 0 : i32
    %c0_i32_1 = arith.constant 0 : i32
    return %c0_i32, %c0_i32_0 : i32, i32
  }
  func.func @transform_1(%arg0: i32, %arg1: i32) -> (i32, i32) {
    %c0_i32 = arith.constant 0 : i32
    %c0_i32_0 = arith.constant 0 : i32
    %c0_i32_1 = arith.constant 0 : i32
    return %c0_i32, %c0_i32_0 : i32, i32
  }
  func.func @transform_2(%arg0: i32, %arg1: i32) -> (i32, i32, i32, i32) {
    %c0_i32 = arith.constant 0 : i32
    %c0_i32_0 = arith.constant 0 : i32
    %c0_i32_1 = arith.constant 0 : i32
    return %arg0, %arg1, %c0_i32, %c0_i32_0 : i32, i32, i32, i32
  }
  func.func @transform_3(%arg0: i32, %arg1: i32) -> (i32, i32, i32, i32) {
    %c0_i32 = arith.constant 0 : i32
    %c0_i32_0 = arith.constant 0 : i32
    %c0_i32_1 = arith.constant 0 : i32
    return %arg0, %arg1, %c0_i32, %c0_i32_0 : i32, i32, i32, i32
  }
}

</mosaic_0001>

<bundles_post_ra>
// kernel: bayesian_model_forward.1
= control target key start
LH: loop header
LB: loop body
LE: loop exit
PB: predicated region body
PF: predicated region fallthrough
CT: control target
= control target key end

     0   :  { %s1583_s12 = smov 0   ;;  %s1585_s13 = smov 0   ;;  %s1787_s0 = inlined_call_operand.vmem [shape: f32[16,36], index: 0, kind: input, shape index: {}]   ;;  %s1788_s1 = inlined_call_operand.vmem [shape: f32[16,1], index: 1, kind: input, shape index: {}]   ;;  %s1789_s2 = inlined_call_operand.vmem [shape: f32[2,1,4,290], index: 2, kind: input, shape index: {}]   ;;  %s1790_s3 = inlined_call_operand.vmem [shape: f32[2,1,16,256], index: 3, kind: output, shape index: {}]  }
   0x1   :  { %s1587_s14 = smov 0  }
   0x2 LB: > { %s25_s15 = sadd.s32 1, %s1536_s13  ;;  %p1388_p0 = scmp.ge.s32.totalorder %s1540_s14, 1  ;;  %s1540_s14 = sphi %s1587_s14, %s13_s14   ;;  %s1536_s13 = sphi %s1585_s13, %s1792_s13   ;;  %s1532_s12 = sphi %s1583_s12, %s1791_s12  }
   0x3   : > { %p27_p1 = scmp.ge.s32.totalorder %s25_s15, 2  ;;  %p157_p2 = scmp.lt.s32.totalorder %s1540_s14, 3 }
   0x5   : > { %s1794_s15 = smov (%p27_p1, %s25_s15), 0  ;;  %p158_p3 = pnand %p1388_p0, %p157_p2 }
   0x6   : > { %v207_v0 = vlaneseq (!%p158_p3)  ;;  %v1542_v1 = vmov (!%p158_p3), 0.0   ;;  %p189_p4 = scmp.lt.s32.totalorder (!%p158_p3), %s1532_s12, 1  ;;  %s1543_s17 = smov (!%p158_p3), 18   ;;  %v1634_v16 = vld [vmem:[%s1787_s0] sm:$0xff] (!%p158_p3)  ;;  %v1641_v17 = vld [vmem:[%s1787_s0 + $0x8] sm:$0xff] (!%p158_p3)  ;;  %vm455_vm4 = vcmask (!%p158_p3), 15360  }
   0x7   : > { %161 = sbr.rel (%p158_p3) target bundleno = 522 (0x20a), region = 32  ;;  %347 = vmatprep.mubr.f32.mxu1 (!%p158_p3), %v1542_v1  ;;  %784 = vmatprep.mubr.f32.mxu0 (!%p158_p3), %v1542_v1  ;;  %s1544_s18 = smov (!%p158_p3), 32   ;;  %vm270_vm5 = vcmask (!%p158_p3), 1039360   ;;  %vm278_vm6 = vcmask (!%p158_p3), 1043456   ;;  %vm575_vm7 = vcmask (!%p158_p3), 130048   ;;  %vm806_vm8 = vcmask (!%p158_p3), 146432  }
   0x8   : > { %v208_v2 = vand.u32 (!%p158_p3), 127, %v207_v0  ;;  %s1545_s22 = smov (!%p158_p3), 2   ;;  %s1546_s23 = smov (!%p158_p3), 16   ;;  %vm926_vm9 = vcmask (!%p158_p3), 261120   ;;  %vm709_vm10 = vcmask (!%p158_p3), 908288   ;;  %vm273_vm11 = vcmask (!%p158_p3), 31744  }
   0x9   : > { %s1547_s24 = smov (!%p158_p3), 127   ;;  %s1548_s25 = smov (!%p158_p3), 34   ;;  %vm1157_vm12 = vcmask (!%p158_p3), 277504   ;;  %vm478_vm13 = vcmask (!%p158_p3), 1031168   ;;  %vm829_vm14 = vcmask (!%p158_p3), 900096   ;;  %vm949_vm15 = vcmask (!%p158_p3), 785408  }
   0xa   : > { %v209_v3 = vadd.s32 (!%p158_p3), 128, %v208_v2  ;;  %v214_v4 = vand.u32 (!%p158_p3), 15, %v208_v2  ;;  %s1549_s26 = smov (!%p158_p3), 111   ;;  %s1550_s29 = smov (!%p158_p3), 124  }
   0xb   : > { %s1551_s5 = smov (!%p158_p3), 112   ;;  %s1552_s6 = smov (!%p158_p3), 108  }
   0xc   : > { %v221_v5 = vand.u32 (!%p158_p3), 15, %v209_v3  ;;  %vm240_vm0 = vcmp.ne.s32.totalorder (!%p158_p3), %v214_v4, 15  ;;  %vm234_vm1 = vcmp.ne.s32.totalorder (!%p158_p3), %v214_v4, 0  ;;  %s1553_s7 = smov (!%p158_p3), 120   ;;  %s1554_s8 = smov (!%p158_p3), 104  }
   0xd   : > { %v1394_v6 = vsel (!%p158_p3), %vm240_vm0, 1.0, %v1542_v1  ;;  %v1392_v7 = vsel (!%p158_p3), %vm234_vm1, 1.0, %v1542_v1  ;;  %s1555_s9 = smov (!%p158_p3), 110   ;;  %s1556_s10 = smov (!%p158_p3), 126   ;;  %vm1060_vm0 = vcmask (!%p158_p3), 777216   ;;  %vm598_vm1 = vcmask (!%p158_p3), 916480  }
   0xe   : > { %s1796_s12 = smov (!%p189_p4, %s1532_s12), 1  ;;  %vm241_vm2 = vcmp.ne.s32.totalorder %v221_v5, 15  ;;  %vm235_vm3 = vcmp.ne.s32.totalorder %v221_v5, 0  ;;  %s1557_s11 = smov 96   ;;  %v1562_v5 = vmov 0  }
   0xf   : > { %s1469_s16 = smul.u32 12, %s1796_s12  ;;  %v1395_v8 = vsel %vm241_vm2, 1.0, %v1542_v1  ;;  %v1393_v9 = vsel %vm235_vm3, 1.0, %v1542_v1  ;;  %s1561_s19 = smov 94   ;;  %1515 = vset.pattern.permute.xlu1 %v1562_v5  ;;  %1516 = vset.pattern.permute.xlu0 %v1562_v5  ;;  %vm1180_vm2 = vcmask 769024  }
  0x10   : > { %v451_v10 = vcombine.low %v1394_v6, %v1395_v8  ;;  %v1610_v11 = vcombine.low %v1392_v7, %v1393_v9  ;;  %v1272_v7 = vld [vmem:[%s1788_s1] sm:$0xff]  ;;  %v1273_v8 = vld [vmem:[%s1788_s1 + $0x8] sm:$0xff] }
  0x11   : > { %s1616_s21 = scalar_lea.vmem %s1789_s2, %s1469_s16  ;;  %s1558_s16 = smov 95  }
  0x12   : > { %803 = vrot.lane.b32.xlu0 %v451_v10, %s1543_s17  ;;  %923 = vrot.lane.b32.xlu1 %v1610_v11, %s1544_s18  ;;  %v1619_v12 = vld [vmem:[%s1616_s21] sm:$0xff]  ;;  %v254_v14 = vld [vmem:[%s1616_s21 + $0x8] sm:$0xf]  ;;  %s1559_s17 = smov 116   ;;  %s1560_s18 = smov 100  }
  0x13   : > { %v1624_v13 = vcombine.high %v1619_v12, %v1619_v12  ;;  %v691_v15 = vld [vmem:[%s1616_s21 + $0x8] sm:$0xf]  ;;  %v251_v37 = vmul.f32 %v1610_v11, %v1619_v12 }
  0x14   : > { %v802_v19 = vld [vmem:[%s1616_s21 + $0x8] sm:$0xf] }
  0x15   : > { %v448_v24 = vld [vmem:[%s1616_s21 + $0x8] sm:$0xf]  ;;  %v361_v44 = vcombine.high %v251_v37, %v251_v37 }
  0x16   : > { %452 = vrot.lane.b32.xlu0 %v451_v10, %s1545_s22  ;;  %572 = vrot.lane.b32.xlu1 %v1610_v11, %s1546_s23  ;;  %v922_v27 = vld [vmem:[%s1616_s21 + $0x8] sm:$0xf] }
  0x17   : > { %v571_v56 = vld [vmem:[%s1616_s21 + $0x8] sm:$0xf] }
  0x18   : > { %v1042_v62 = vld [vmem:[%s1616_s21 + $0x8] sm:$0xf] }
  0x19   : > { %v1153_v4 = vld [vmem:[%s1616_s21 + $0x8] sm:$0xf] }
  0x1a   : > { %268 = vrot.lane.b32.xlu0 %v254_v14, %s1547_s24  ;;  %266 = vrot.lane.b32.xlu1 %v1624_v13, %s1547_s24 }
  0x1e   : > { %1154 = vrot.lane.b32.xlu0 %v451_v10, %s1548_s25  ;;  %705 = vrot.lane.b32.xlu1 %v1624_v13, %s1549_s26 }
  0x22   : > { %707 = vrot.lane.b32.xlu0 %v691_v15, %s1549_s26  ;;  %264 = vrot.lane.b32.xlu1 %v1619_v12, %s1547_s24  ;;  %s1434_s24 = sshll.u32 %s1796_s12, 5 }
  0x23   : > { %s206_s27 = scalar_lea.vmem %s1790_s3, %s1434_s24 }
  0x26   : > { %703 = vrot.lane.b32.xlu0 %v1619_v12, %s1549_s26  ;;  %257 = vrot.lane.b32.xlu1 %v1634_v16, %s1550_s29 }
  0x2a   : > { %259 = vrot.lane.b32.xlu1 %v1641_v17, %s1550_s29  ;;  %696 = vrot.lane.b32.xlu0 %v1634_v16, %s1551_s5 }
  0x2e   : > { %816 = vrot.lane.b32.xlu1 %v1634_v16, %s1552_s6  ;;  %818 = vrot.lane.b32.xlu0 %v1641_v17, %s1552_s6 }
  0x32   : > { %465 = vrot.lane.b32.xlu1 %v1634_v16, %s1553_s7  ;;  %936 = vrot.lane.b32.xlu0 %v1634_v16, %s1554_s8 }
  0x36   : > { %467 = vrot.lane.b32.xlu1 %v1641_v17, %s1553_s7  ;;  %938 = vrot.lane.b32.xlu0 %v1641_v17, %s1554_s8 }
  0x84   : > { %v804_v18 = vpop.permute.xlu0 %803  ;;  %v924_v20 = vpop.permute.xlu1 %923 }
  0x85   : > { %v805_v21 = vrot.slane %v804_v18, 4  ;;  %v925_v30 = vrot.slane %v924_v20, 4 }
  0x87   : > { %v811_v22 = vmul.f32 %v805_v21, %v802_v19  ;;  %v931_v35 = vmul.f32 %v925_v30, %v922_v27  ;;  %v807_v39 = vsel %vm806_vm8, %v805_v21, %v804_v18  ;;  %v927_v45 = vsel %vm926_vm9, %v925_v30, %v924_v20 }
  0x88   : > { %v453_v23 = vpop.permute.xlu0 %452  ;;  %v1654_v25 = vpop.permute.xlu1 %572  ;;  %v810_v43 = vmul.f32 %v807_v39, %v1619_v12  ;;  %v930_v50 = vmul.f32 %v927_v45, %v1619_v12 }
  0x89   : > { %v454_v26 = vrot.slane %v453_v23, 4  ;;  %827 = vrot.lane.b32.xlu1 %v811_v22, %s1555_s9  ;;  %v574_v31 = vrot.slane %v1654_v25, 4 }
  0x8a   : > { %v822_v55 = vcombine.high %v810_v43, %v810_v43  ;;  %v942_v57 = vcombine.high %v930_v50, %v930_v50 }
  0x8b   : > { %v456_v28 = vsel %vm455_vm4, %v454_v26, %v453_v23  ;;  %v460_v29 = vmul.f32 %v454_v26, %v448_v24  ;;  %v576_v38 = vsel %vm575_vm7, %v574_v31, %v1654_v25  ;;  %v580_v60 = vmul.f32 %v574_v31, %v571_v56 }
  0x8c   : > { %v459_v32 = vmul.f32 %v456_v28, %v1619_v12  ;;  %v269_v33 = vpop.permute.xlu0 %268  ;;  %v267_v34 = vpop.permute.xlu1 %266  ;;  %v579_v42 = vmul.f32 %v576_v38, %v1619_v12 }
  0x8d   : > { %476 = vrot.lane.b32.xlu0 %v460_v29, %s1556_s10  ;;  %v272_v36 = vsel %vm270_vm5, %v267_v34, %v269_v33 }
  0x8e   : > { %472 = vrot.lane.b32.xlu1 %v459_v32, %s1556_s10  ;;  %1396 = vmatprep.subr.msk.mxu1 %vm278_vm6, %v272_v36  ;;  %v471_v51 = vcombine.high %v459_v32, %v459_v32  ;;  %v591_v0 = vcombine.high %v579_v42, %v579_v42 }
  0x90   : > { %v1667_v40 = vpop.permute.xlu0 %1154  ;;  %v706_v41 = vpop.permute.xlu1 %705 }
  0x91   : > { %947 = vrot.lane.b32.xlu0 %v931_v35, %s1557_s11  ;;  %v1156_v61 = vrot.slane %v1667_v40, 4 }
  0x92   : > { %1056 = vrot.lane.b32.xlu1 %v1624_v13, %s1558_s16 }
  0x93   : > { %v1158_v63 = vsel %vm1157_vm12, %v1156_v61, %v1667_v40  ;;  %v1162_v6 = vmul.f32 %v1156_v61, %v1153_v4 }
  0x94   : > { %v708_v46 = vpop.permute.xlu0 %707  ;;  %v265_v47 = vpop.permute.xlu1 %264  ;;  %v1161_v2 = vmul.f32 %v1158_v63, %v1619_v12 }
  0x95   : > { %823 = vrot.lane.b32.xlu0 %v810_v43, %s1555_s9  ;;  %v271_v48 = vsel %vm270_vm5, %v265_v47, %v267_v34  ;;  %v1677_v49 = vsel %vm709_vm10, %v706_v41, %v708_v46 }
  0x96   : > { %592 = vrot.lane.b32.xlu1 %v579_v42, %s1551_s5  ;;  %1397 = vmatpush1.msk.msra.mxu1 %vm278_vm6, %v271_v48  ;;  %v1173_v3 = vcombine.high %v1161_v2, %v1161_v2 }
  0x97   : > { %1412 = vmatprep.subr.msk.mxu0 %vm278_vm6, %v1677_v49  ;;  %1400 = vmatprep.subr.msk.mxu1 %vm278_vm6, %v361_v44 }
  0x98   : > { %v704_v52 = vpop.permute.xlu0 %703  ;;  %v258_v53 = vpop.permute.xlu1 %257 }
  0x99   : > { %943 = vrot.lane.b32.xlu0 %v930_v50, %s1557_s11  ;;  %v1687_v54 = vsel %vm709_vm10, %v704_v52, %v706_v41  ;;  %1398 = vmatmul.mubr.msk.f32.vlgmr.msra.gmra.mrb[0].mxu1 %vm273_vm11, %v258_v53 }
  0x9a   : > { %474 = vrot.lane.b32.xlu1 %v471_v51, %s1556_s10  ;;  %1413 = vmatpush1.msk.msra.mxu0 %vm278_vm6, %v1687_v54 }
  0x9b   : > { %353 = vmatprep.mubr.f32.mxu1 %v1542_v1  ;;  %1401 = vmatpush1.msk.msra.mxu1 %vm278_vm6, %v251_v37 }
  0x9c   : > { %v697_v58 = vpop.permute.xlu0 %696  ;;  %v260_v59 = vpop.permute.xlu1 %259 }
  0x9d   : > { %825 = vrot.lane.b32.xlu0 %v822_v55, %s1555_s9  ;;  %1414 = vmatmul.mubr.msk.f32.vlgmr.msra.gmra.mrb[0].mxu0 %vm273_vm11, %v697_v58 }
  0x9e   : > { %945 = vrot.lane.b32.xlu1 %v942_v57, %s1557_s11  ;;  %1399 = vmatmul.mubr.msk.f32.gmra.mrb[2].mxu1 %vm273_vm11, %v260_v59 }
  0x9f   : > { %434 = vmatprep.mubr.f32.mxu1 %v1542_v1  ;;  %904 = vmatprep.mubr.f32.mxu0 %v1542_v1 }
  0xa0   : > { %v817_v9 = vpop.permute.xlu1 %816  ;;  %v819_v10 = vpop.permute.xlu0 %818 }
  0xa1   : > { %596 = vrot.lane.b32.xlu0 %v580_v60, %s1551_s5 }
  0xa2   : > { %585 = vrot.lane.b32.xlu1 %v1634_v16, %s1559_s17  ;;  %1402 = vmatmul.mubr.msk.f32.vlgmr.msra.gmra.mrb[0].mxu1 %vm273_vm11, %v1634_v16 }
  0xa3   : > { %440 = vmatprep.mubr.f32.mxu1 %v1542_v1 }
  0xa4   : > { %v466_v11 = vpop.permute.xlu1 %465 }
  0xa5   : > { %1058 = vrot.lane.b32.xlu0 %v1042_v62, %s1558_s16 }
  0xa6   : > { %594 = vrot.lane.b32.xlu1 %v591_v0, %s1551_s5  ;;  %1403 = vmatmul.mubr.msk.f32.gmra.mrb[2].mxu1 %vm273_vm11, %v1641_v17 }
  0xa7   : > { %553 = vmatprep.mubr.f32.mxu1 %v1542_v1 }
  0xa8   : > { %v468_v13 = vpop.permute.xlu1 %467 }
  0xa9   : > { %1054 = vrot.lane.b32.xlu0 %v1619_v12, %s1558_s16  ;;  %v937_v12 = vpop.permute.xlu0 %936 }
  0xaa   : > { %587 = vrot.lane.b32.xlu1 %v1641_v17, %s1559_s17 }
  0xad   : > { %1047 = vrot.lane.b32.xlu0 %v1634_v16, %s1560_s18  ;;  %v939_v14 = vpop.permute.xlu0 %938 }
  0xae   : > { %1176 = vrot.lane.b32.xlu1 %v1173_v3, %s1561_s19 }
  0xb1   : > { %1049 = vrot.lane.b32.xlu0 %v1641_v17, %s1560_s18 }
  0xb2   : > { %1174 = vrot.lane.b32.xlu1 %v1161_v2, %s1561_s19 }
  0xb5   : > { %1178 = vrot.lane.b32.xlu0 %v1162_v6, %s1561_s19 }
  0xb6   : > { %698 = vrot.lane.b32.xlu1 %v1641_v17, %s1551_s5 }
  0xb9   : > { %1167 = vrot.lane.b32.xlu0 %v1634_v16, %s1557_s11 }
  0xba   : > { %1276 = vperm.xlu1 %1515, %v1272_v7  }
  0xbd   : > { %1169 = vrot.lane.b32.xlu0 %v1641_v17, %s1557_s11 }
  0xc1   : > { %1281 = vperm.xlu0 %1516, %v1273_v8  }
  0xfb   : > { %v828_v15 = vpop.permute.xlu1 %827 }
  0xff   : > { %v477_v18 = vpop.permute.xlu0 %476 }
 0x100   : > { %v473_v19 = vpop.permute.xlu1 %472 }
 0x103   : > { %v948_v20 = vpop.permute.xlu0 %947 }
 0x104   : > { %v1057_v16 = vpop.permute.xlu1 %1056 }
 0x107   : > { %v824_v21 = vpop.permute.xlu0 %823 }
 0x108   : > { %v593_v22 = vpop.permute.xlu1 %592 }
 0x10b   : > { %v944_v17 = vpop.permute.xlu0 %943 }
 0x10c   : > { %v475_v23 = vpop.permute.xlu1 %474 }
 0x10d   : > { %v479_v24 = vsel %vm478_vm13, %v473_v19, %v475_v23  ;;  %v480_v25 = vsel %vm478_vm13, %v475_v23, %v477_v18 }
 0x10e   : > { %1404 = vmatprep.subr.msk.mxu1 %vm278_vm6, %v480_v25 }
 0x10f   : > { %v826_v26 = vpop.permute.xlu0 %825  ;;  %1405 = vmatpush1.msk.msra.mxu1 %vm278_vm6, %v479_v24 }
 0x110   : > { %v830_v27 = vsel %vm829_vm14, %v824_v21, %v826_v26  ;;  %v831_v28 = vsel %vm829_vm14, %v826_v26, %v828_v15  ;;  %v946_v29 = vpop.permute.xlu1 %945  ;;  %1406 = vmatmul.mubr.msk.f32.vlgmr.msra.gmra.mrb[0].mxu1 %vm273_vm11, %v466_v11 }
 0x111   : > { %v951_v30 = vsel %vm949_vm15, %v946_v29, %v948_v20  ;;  %1416 = vmatprep.subr.msk.mxu0 %vm278_vm6, %v831_v28  ;;  %559 = vmatprep.mubr.f32.mxu1 %v1542_v1  ;;  %v950_v31 = vsel %vm949_vm15, %v944_v17, %v946_v29 }
 0x112   : > { %1417 = vmatpush1.msk.msra.mxu0 %vm278_vm6, %v830_v27 }
 0x113   : > { %v597_v32 = vpop.permute.xlu0 %596  ;;  %1418 = vmatmul.mubr.msk.f32.vlgmr.msra.gmra.mrb[0].mxu0 %vm273_vm11, %v817_v9  ;;  %1420 = vmatprep.subr.msk.mxu0 %vm278_vm6, %v951_v30 }
 0x114   : > { %1421 = vmatpush1.msk.msra.mxu0 %vm278_vm6, %v950_v31  ;;  %v586_v33 = vpop.permute.xlu1 %585  ;;  %1407 = vmatmul.mubr.msk.f32.gmra.mrb[2].mxu1 %vm273_vm11, %v468_v13 }
 0x115   : > { %910 = vmatprep.mubr.f32.mxu0 %v1542_v1  ;;  %673 = vmatprep.mubr.f32.mxu1 %v1542_v1 }
 0x117   : > { %v1059_v34 = vpop.permute.xlu0 %1058  ;;  %1419 = vmatmul.mubr.msk.f32.gmra.mrb[2].mxu0 %vm273_vm11, %v819_v10 }
 0x118   : > { %v1062_v35 = vsel %vm1060_vm0, %v1057_v16, %v1059_v34  ;;  %v595_v36 = vpop.permute.xlu1 %594  ;;  %1024 = vmatprep.mubr.f32.mxu0 %v1542_v1 }
 0x119   : > { %v599_v37 = vsel %vm598_vm1, %v593_v22, %v595_v36  ;;  %v600_v38 = vsel %vm598_vm1, %v595_v36, %v597_v32  ;;  %1424 = vmatprep.subr.msk.mxu0 %vm278_vm6, %v1062_v35 }
 0x11a   : > { %1408 = vmatprep.subr.msk.mxu1 %vm278_vm6, %v600_v38 }
 0x11b   : > { %v1055_v39 = vpop.permute.xlu0 %1054  ;;  %1409 = vmatpush1.msk.msra.mxu1 %vm278_vm6, %v599_v37  ;;  %1422 = vmatmul.mubr.msk.f32.vlgmr.msra.gmra.mrb[0].mxu0 %vm273_vm11, %v937_v12 }
 0x11c   : > { %v1061_v40 = vsel %vm1060_vm0, %v1055_v39, %v1057_v16  ;;  %v588_v41 = vpop.permute.xlu1 %587  ;;  %1410 = vmatmul.mubr.msk.f32.vlgmr.msra.gmra.mrb[0].mxu1 %vm273_vm11, %v586_v33  ;;  %1435 = vmatprep.subr.msk.mxu1 %vm278_vm6, %v1677_v49 }
 0x11d   : > { %1436 = vmatpush1.msk.msra.mxu1 %vm278_vm6, %v1687_v54  ;;  %1425 = vmatpush1.msk.msra.mxu0 %vm278_vm6, %v1061_v40 }
 0x11e   : > { %1030 = vmatprep.mubr.f32.mxu0 %v1542_v1  ;;  %679 = vmatprep.mubr.f32.mxu1 %v1542_v1 }
 0x11f   : > { %v1048_v42 = vpop.permute.xlu0 %1047  ;;  %1423 = vmatmul.mubr.msk.f32.gmra.mrb[2].mxu0 %vm273_vm11, %v939_v14 }
 0x120   : > { %v1177_v43 = vpop.permute.xlu1 %1176  ;;  %1411 = vmatmul.mubr.msk.f32.gmra.mrb[2].mxu1 %vm273_vm11, %v588_v41  ;;  %1135 = vmatprep.mubr.f32.mxu0 %v1542_v1 }
 0x121   : > { %790 = vmatprep.mubr.f32.mxu1 %v1542_v1 }
 0x123   : > { %v1050_v44 = vpop.permute.xlu0 %1049  ;;  %1426 = vmatmul.mubr.msk.f32.vlgmr.msra.gmra.mrb[0].mxu0 %vm273_vm11, %v1048_v42 }
 0x124   : > { %v1175_v45 = vpop.permute.xlu1 %1174  ;;  %1141 = vmatprep.mubr.f32.mxu0 %v1542_v1 }
 0x125   : > { %v1181_v49 = vsel %vm1180_vm2, %v1175_v45, %v1177_v43 }
 0x127   : > { %v1179_v46 = vpop.permute.xlu0 %1178  ;;  %1427 = vmatmul.mubr.msk.f32.gmra.mrb[2].mxu0 %vm273_vm11, %v1050_v44 }
 0x128   : > { %v1182_v47 = vsel %vm1180_vm2, %v1177_v43, %v1179_v46  ;;  %v699_v48 = vpop.permute.xlu1 %698  ;;  %1255 = vmatprep.mubr.f32.mxu0 %v1542_v1 }
 0x129   : > { %1415 = vmatmul.mubr.msk.f32.vlgmr.msra.gmra.mrb[2].mxu1 %vm273_vm11, %v699_v48  ;;  %1428 = vmatprep.subr.msk.mxu0 %vm278_vm6, %v1182_v47 }
 0x12a   : > { %1429 = vmatpush1.msk.msra.mxu0 %vm278_vm6, %v1181_v49 }
 0x12b   : > { %v1168_v50 = vpop.permute.xlu0 %1167 }
 0x12c   : > { %1430 = vmatmul.mubr.msk.f32.vlgmr.msra.gmra.mrb[0].mxu0 %vm273_vm11, %v1168_v50 }
 0x12d   : > { %1261 = vmatprep.mubr.f32.mxu0 %v1542_v1 }
 0x12f   : > { %v1170_v51 = vpop.permute.xlu0 %1169 }
 0x130   : > { %1431 = vmatmul.mubr.msk.f32.gmra.mrb[2].mxu0 %vm273_vm11, %v1170_v51 }
 0x139   : > { %v1277_v57 = vpop.permute.xlu1 %1276 }
 0x140   : > { %v1282_v63 = vpop.permute.xlu0 %1281 }
 0x1ef   : > { %v675_v52 = vpop.f32.mrb[0].mxu1 }
 0x1f0   : > { %v677_v53 = vpop.f32.mrb[1].mxu1 }
 0x1fc   : > { %v792_v54 = vpop.f32.mrb[2].mxu1 }
 0x1fd   : > { %v794_v55 = vpop.f32.mrb[3].mxu1 }
 0x1ff   : > { %v1257_v56 = vpop.f32.mrb[0].mxu0 }
 0x200   : > { %v1437_v58 = vadd.f32 %v1257_v56, %v675_v52  ;;  %v1259_v59 = vpop.f32.mrb[1].mxu0 }
 0x201   : > { %v1438_v60 = vadd.f32 %v1259_v59, %v677_v53 }
 0x202   : > { %v1284_v61 = vadd.f32 %v1437_v58, %v1277_v57 }
 0x203   : > { %v1285_v62 = vadd.f32 %v1438_v60, %v1277_v57  ;;  %v1263_v1 = vpop.f32.mrb[2].mxu0 }
 0x204   : > { %1288 = vst [vmem:[%s206_s27] sm:$0xff] %v1284_v61  ;;  %v1439_v0 = vadd.f32 %v1263_v1, %v792_v54  ;;  %v1265_v2 = vpop.f32.mrb[3].mxu0 }
 0x205   : > { %1289 = vst [vmem:[%s206_s27 + $0x8] sm:$0xff] %v1285_v62  ;;  %v1440_v3 = vadd.f32 %v1265_v2, %v794_v55 }
 0x206   : > { %v1286_v4 = vadd.f32 %v1439_v0, %v1282_v63 }
 0x207   : > { %v1287_v5 = vadd.f32 %v1440_v3, %v1282_v63 }
 0x208   : > { %1290 = vst [vmem:[%s206_s27 + $0x10] sm:$0xff] %v1286_v4 }
 0x209   : > { %1291 = vst [vmem:[%s206_s27 + $0x18] sm:$0xff] %v1287_v5 }
 0x20a PF: > { %s13_s14 = sadd.s32 1, %s1540_s14   ;;  %s1791_s12 = smov %s1536_s13 }
 0x20b   : > { %p10_p5 = scmp.ge.s32.totalorder %s13_s14, 4   ;;  %s1792_s13 = smov %s1794_s15 }
 0x20d   :  { %12 = sbr.rel (!%p10_p5) target bundleno = 2 (0x2), region = 62 }

</bundles_post_ra>
